<compile_context>
chip_gen: v6e
topology: v6e:2x2x1
jax: 0.10.0
libtpu: 0.0.40
codegen_flags: <defaults>
</compile_context>

<pallas_src>
import functools
import math

import jax
import jax.numpy as jnp
from jax.experimental import pallas as pl
from jax.experimental.pallas import tpu as pltpu


_MAX_TILE_ROWS = 4096                       # cap on row block (sublanes)
_MAX_PACK_LANES = 8192                      # cap on lcm-based lane repack width
_SMALL_FALLBACK_BYTES = 4 * 1024 * 1024     # below this, let XLA fuse x * w


def _gprompt_kernel(x_ref, w_ref, o_ref):
    # x_ref: (tile_rows, tile_d) node-embedding tile in VMEM
    # w_ref: (1, tile_d) weight strip, broadcast over the sublane (row) axis
    # Pure VPU elementwise multiply; explicit cast keeps the store dtype exact.
    o_ref[...] = (x_ref[...] * w_ref[...]).astype(o_ref.dtype)


def _round_up(x: int, m: int) -> int:
    return ((x + m - 1) // m) * m


@functools.lru_cache(maxsize=None)
def _vmem_budgets():
    """Return (tile_budget_bytes, vmem_limit_bytes), generation-aware."""
    try:
        cap = pltpu.get_tpu_info().vmem_capacity_bytes
    except Exception:
        cap = None
    if cap is not None and cap <= 80 * 1024 * 1024:
        # v7x-class core: 64 MiB VMEM, ~3.2 TB/s HBM -> bigger tiles amortise
        # the fixed ~0.35 us per-grid-step overhead.
        return 40 * 1024 * 1024, 52 * 1024 * 1024
    # v5e / v6e (128 MiB VMEM): ~6 MiB tiles are already past the knee.
    return 24 * 1024 * 1024, 32 * 1024 * 1024


def _choose_tiles(rows, d, itemsize, tile_budget, min_row_blocks):
    """Pick (tile_rows, tile_d) so 2x in + 2x out tiles fit the VMEM budget."""
    per_tile = max(1, tile_budget // 4)
    row_bytes = max(1, d * itemsize)

    # Prefer a full-row (contiguous-DMA) tile whenever >= 8 rows fit the
    # budget, or when D is not 128-aligned (BlockSpec then requires full D).
    if d % 128 != 0 or 8 * row_bytes <= per_tile:
        tile_d = d
    else:
        # Extremely wide rows only: block D on 128-lane boundaries.
        tile_d = max(128, ((per_tile // (8 * itemsize)) // 128) * 128)

    if rows <= 8:
        return rows, tile_d                  # full-extent row block (legal)

    tile_rows = per_tile // max(1, tile_d * itemsize)
    tile_rows = max(8, (tile_rows // 8) * 8)             # multiple of 8 sublanes
    tile_rows = min(tile_rows, _MAX_TILE_ROWS)
    tile_rows = min(tile_rows, _round_up(rows, 8))       # don't exceed data
    if min_row_blocks > 1:
        # Keep >= 2 blocks along the (parallel) row axis so v7x's two
        # TensorCores both get work; costs one extra grid step elsewhere.
        cap = max(8, _round_up(pl.cdiv(rows, min_row_blocks), 8))
        tile_rows = min(tile_rows, cap)
    return tile_rows, tile_d


def _gprompt_pallas_2d(x: jax.Array, w: jax.Array, *,
                       donate_input: bool = False) -> jax.Array:
    """x: (R, D) row-major slab, w: (1, D) already in x.dtype.  Returns x * w."""
    rows, d = x.shape
    tile_budget, vmem_limit = _vmem_budgets()
    tile_rows, tile_d = _choose_tiles(rows, d, x.dtype.itemsize,
                                      tile_budget, min_row_blocks=2)

    if tile_d == d:
        # 1-D grid over rows; the weight strip stays resident across the call.
        grid = (pl.cdiv(rows, tile_rows),)
        in_specs = [pl.BlockSpec((tile_rows, d), lambda i: (i, 0)),
                    pl.BlockSpec((1, d), lambda i: (0, 0))]
        out_specs = pl.BlockSpec((tile_rows, d), lambda i: (i, 0))
        dims = ("parallel",)
    else:
        # Feature axis OUTER so the weight block index is constant across the
        # inner row loop and Pallas does not re-DMA it every step.
        grid = (pl.cdiv(d, tile_d), pl.cdiv(rows, tile_rows))
        in_specs = [pl.BlockSpec((tile_rows, tile_d), lambda j, i: (i, j)),
                    pl.BlockSpec((1, tile_d), lambda j, i: (0, j))]
        out_specs = pl.BlockSpec((tile_rows, tile_d), lambda j, i: (i, j))
        dims = ("parallel", "parallel")

    return pl.pallas_call(
        _gprompt_kernel,
        out_shape=jax.ShapeDtypeStruct((rows, d), x.dtype),
        grid_spec=pltpu.PrefetchScalarGridSpec(
            num_scalar_prefetch=0,
            grid=grid,
            in_specs=in_specs,
            out_specs=out_specs,
        ),
        compiler_params=pltpu.CompilerParams(
            dimension_semantics=dims,
            vmem_limit_bytes=vmem_limit,
        ),
        input_output_aliases=({0: 0} if donate_input else {}),
    )(x, w)


def _pack_lane_dense(x: jax.Array, w: jax.Array):
    """Lane-dense repack for D not a multiple of 128.

    Returns (x_packed, w_packed, unpack_fn) or None when repacking is not
    possible / not worthwhile.  Pure layout plumbing; semantics unchanged.
    """
    n, d = x.shape
    if d % 128 == 0:
        return None                              # already lane-dense
    lane = (d * 128) // math.gcd(d, 128)         # lcm(d, 128), multiple of 128
    if lane > _MAX_PACK_LANES:
        return None
    reps = lane // d
    w_packed = jnp.tile(w, (1, reps))
    total = n * d
    if total % lane == 0:
        x_packed = x.reshape(-1, lane)           # free: contiguous row-major
        unpack = lambda o: o.reshape(n, d)
        return x_packed, w_packed, unpack
    if d < 128:
        # Narrow lane axes are the expensive (masked vst.msk) case; pay one
        # pad copy to present a 128-aligned lane axis to the kernel.
        padded = _round_up(total, lane)
        x_flat = jnp.pad(x.reshape(-1), (0, padded - total))
        x_packed = x_flat.reshape(-1, lane)
        unpack = lambda o: o.reshape(-1)[:total].reshape(n, d)
        return x_packed, w_packed, unpack
    return None


def gprompt_forward(node_embeddings: jax.Array, weight: jax.Array, *,
                    force_pallas: bool = False,
                    donate_input: bool = False) -> jax.Array:
    """Compute node_embeddings * weight with weight broadcast over rows.

    Output dtype follows node_embeddings.dtype (weight is pre-cast to it),
    a deliberate deviation from PyTorch promotion for bf16 x / f32 weight.
    """
    n, d = node_embeddings.shape
    assert weight.shape == (1, d)

    x = node_embeddings
    w = weight.astype(x.dtype)   # keep the multiply in the embedding dtype

    # Tiny problems: this op has zero arithmetic intensity and a standalone
    # pallas_call is a fusion barrier; let XLA fuse it into its neighbours.
    nbytes = x.size * x.dtype.itemsize
    if not force_pallas and nbytes < _SMALL_FALLBACK_BYTES:
        return x * w

    packed = _pack_lane_dense(x, w)
    if packed is not None:
        x_p, w_p, unpack = packed
        return unpack(_gprompt_pallas_2d(x_p, w_p, donate_input=donate_input))
    return _gprompt_pallas_2d(x, w, donate_input=donate_input)


def init_gprompt_weight(key: jax.Array, input_dim: int) -> jax.Array:
    """Xavier / Glorot uniform init for a (1, input_dim) parameter,
    matching torch.nn.init.xavier_uniform_ (fan_in=input_dim, fan_out=1)."""
    fan_in, fan_out = input_dim, 1
    bound = (6.0 / (fan_in + fan_out)) ** 0.5
    return jax.random.uniform(key, (1, input_dim), dtype=jnp.float32,
                              minval=-bound, maxval=bound)


if __name__ == "__main__":
    key = jax.random.PRNGKey(0)
    k_w1, k_x1, k_w2, k_x2, k_w3, k_x3, k_w4, k_x4 = jax.random.split(key, 8)

    # Case 1: small input_dim (32) -> exact lane-dense repack (L = 128).
    n1, d1 = 64, 32
    w1 = init_gprompt_weight(k_w1, d1)
    x1 = jax.random.normal(k_x1, (n1, d1), dtype=jnp.float32)
    out1 = jax.block_until_ready(gprompt_forward(x1, w1, force_pallas=True))
    assert out1.shape == (n1, d1) and out1.dtype == x1.dtype
    assert jnp.allclose(out1, x1 * w1, atol=1e-6, rtol=1e-6)

    # Case 2: lane-aligned input_dim (256), N=37 -> full-row tile, 1-D grid,
    # >=2 parallel row blocks and a masked partial boundary block.
    n2, d2 = 37, 256
    w2 = init_gprompt_weight(k_w2, d2)
    x2 = jax.random.normal(k_x2, (n2, d2), dtype=jnp.float32)
    out2 = jax.block_until_ready(gprompt_forward(x2, w2, force_pallas=True))
    assert out2.shape == (n2, d2)
    assert jnp.allclose(out2, x2 * w2, atol=1e-6, rtol=1e-6)

    # Case 3: awkward input_dim (48, 128 % 48 != 0): lcm repack with padding
    # (L = lcm(48, 128) = 384).
    n3, d3 = 37, 48
    w3 = init_gprompt_weight(k_w3, d3)
    x3 = jax.random.normal(k_x3, (n3, d3), dtype=jnp.float32)
    out3 = jax.block_until_ready(gprompt_forward(x3, w3, force_pallas=True))
    assert out3.shape == (n3, d3)
    assert jnp.allclose(out3, x3 * w3, atol=1e-6, rtol=1e-6)

    # Case 4: bf16 embeddings with an f32 weight -> weight pre-cast to bf16.
    n4, d4 = 40, 64
    w4 = init_gprompt_weight(k_w4, d4)
    x4 = jax.random.normal(k_x4, (n4, d4), dtype=jnp.float32).astype(jnp.bfloat16)
    out4 = jax.block_until_ready(gprompt_forward(x4, w4, force_pallas=True))
    ref4 = x4 * w4.astype(jnp.bfloat16)
    assert out4.shape == (n4, d4) and out4.dtype == jnp.bfloat16
    assert jnp.allclose(out4.astype(jnp.float32), ref4.astype(jnp.float32),
                        atol=2e-2, rtol=5e-2)

    print("KERNEL_OK")
</pallas_src>

<mosaic_0001>
module attributes {stable_mosaic.version = 11 : i64} {
  func.func @_gprompt_kernel(%arg0: i32, %arg1: memref<8x128xf32, #tpu.memory_space<vmem>>, %arg2: memref<1x128xf32, #tpu.memory_space<vmem>>, %arg3: memref<8x128xf32, #tpu.memory_space<vmem>>) attributes {dimension_semantics = [#tpu.dimension_semantics<parallel>], iteration_bounds = array<i64: 2>, scalar_prefetch = 0 : i64, scratch_operands = 0 : i64, tpu.core_type = #tpu.core_type<tc>, window_params = [{transform_indices = @transform_0, window_bounds = array<i64: 8, 128>}, {pipeline_mode = #tpu.pipeline_mode<synchronous>, transform_indices = @transform_1, window_bounds = array<i64: 1, 128>}, {transform_indices = @transform_2, window_bounds = array<i64: 8, 128>}]} {
    %c0 = arith.constant 0 : index
    %c0_0 = arith.constant 0 : index
    %0 = vector.load %arg1[%c0, %c0_0] : memref<8x128xf32, #tpu.memory_space<vmem>>, vector<8x128xf32>
    %c0_1 = arith.constant 0 : index
    %c0_2 = arith.constant 0 : index
    %1 = vector.load %arg2[%c0_1, %c0_2] : memref<1x128xf32, #tpu.memory_space<vmem>>, vector<1x128xf32>
    %2 = vector.broadcast %1 : vector<1x128xf32> to vector<8x128xf32>
    %3 = arith.mulf %0, %2 : vector<8x128xf32>
    %c0_3 = arith.constant 0 : index
    %c0_4 = arith.constant 0 : index
    %4 = vector.load %arg3[%c0_3, %c0_4] : memref<8x128xf32, #tpu.memory_space<vmem>>, vector<8x128xf32>
    tpu.vector_store %arg3[%c0_3, %c0_4], %3 {strides = array<i32>} : memref<8x128xf32, #tpu.memory_space<vmem>>, vector<8x128xf32>,
    return
  }
  func.func @transform_0(%arg0: i32) -> (i32, i32) {
    %c0_i32 = arith.constant 0 : i32
    %c0_i32_0 = arith.constant 0 : i32
    return %arg0, %c0_i32 : i32, i32
  }
  func.func @transform_1(%arg0: i32) -> (i32, i32) {
    %c0_i32 = arith.constant 0 : i32
    %c0_i32_0 = arith.constant 0 : i32
    %c0_i32_1 = arith.constant 0 : i32
    return %c0_i32, %c0_i32_0 : i32, i32
  }
  func.func @transform_2(%arg0: i32) -> (i32, i32) {
    %c0_i32 = arith.constant 0 : i32
    %c0_i32_0 = arith.constant 0 : i32
    return %arg0, %c0_i32 : i32, i32
  }
}

</mosaic_0001>

<bundles_post_ra>
// kernel: tpu_custom_call.1
= control target key start
LH: loop header
LB: loop body
LE: loop exit
PB: predicated region body
PF: predicated region fallthrough
CT: control target
= control target key end

     0   :  { %7 = vsyncpa [#allocation3], 0  ;;  %s567_s0 = inlined_call_operand.hbm [shape: f32[16,128], index: 0, kind: input, shape index: {}]   ;;  %s568_s1 = inlined_call_operand.vmem [shape: f32[1,128], index: 1, kind: input, shape index: {}]   ;;  %s569_s2 = inlined_call_operand.hbm [shape: f32[16,128], index: 2, kind: output, shape index: {}]  }
   0x1   :  { %9 = vsyncpa [#allocation3 + $0x1], 0 }
   0x2   :  { %10 = vsyncpa [#allocation4], 0 }
   0x3   :  { %12 = vsyncpa [#allocation4 + $0x1], 0  ;;  %s423_s9 = smov 0   ;;  %s425_s10 = smov 0  }
   0x4   :  { %s427_s11 = smov 0   ;;  %s429_s12 = smov 0  }
   0x5 LB: > { %s444_s13 = sadd.s32 4294967295, %s404_s12   ;;  %s253_s14 = sadd.s32 4294967294, %s404_s12   ;;  %s404_s12 = sphi %s429_s12, %s586_s12   ;;  %s400_s11 = sphi %s427_s11, %s585_s11   ;;  %s396_s10 = sphi %s425_s10, %s584_s10   ;;  %s392_s9 = sphi %s423_s9, %s583_s9  }
   0x6   : > { %s448_s15 = sadd.s32 1, %s404_s12   ;;  %s25_s16 = sadd.s32 1, %s400_s11 }
   0x7   : > { %s22_s17 = ssub.s32 %s404_s12, %s448_s15  ;;  %p32_p0 = scmp.ne.s32.totalorder %s400_s11, %s396_s10 }
   0x8   : > { %p23_p1 = scmp.eq.s32.totalorder %s22_s17, 0  ;;  %p33_p2 = scmp.eq.s32.totalorder %s404_s12, 0 }
   0x9   : > { %p38_p3 = scmp.ne.s32.totalorder %s396_s10, %s392_s9  ;;  %p39_p4 = scmp.eq.s32.totalorder %s444_s13, 0 }
   0xa   : > { %s460_s18 = scalar_select %p23_p1, %s400_s11, %s25_s16  }
   0xb   : > { %p462_p5 = por %p33_p2, %p32_p0  ;;  %p466_p6 = por %p39_p4, %p38_p3 }
   0xc   : > { %p83_p7 = scmp.eq.s32.totalorder %s444_s13, 1  ;;  %p89_p8 = scmp.eq.s32.totalorder %s253_s14, 1 }
   0xd   : > { %s573_s20 = scalar_select %p466_p6, 1, 0 }
   0xe   : > { %p278_p10 = scmp.lt.s32.totalorder %s404_s12, 2  ;;  %p473_p11 = por %p83_p7, %p32_p0 }
   0xf   : > { %p477_p12 = por %p89_p8, %p38_p3  ;;  %s112_s23 = sand.u32 1, %s400_s11  }
  0x10   : > { %s574_s21 = scalar_select %p473_p11, 1, 0 }
  0x11   : > { %s575_s22 = scalar_select %p477_p12, 1, 0 }
  0x12   : > { %s257_s24 = sshll.u32 %s404_s12, 7  ;;  %s256_s25 = sshll.u32 %s112_s23, 3 }
  0x13   : > { %s486_s28 = scalar_lea.hbm %s567_s0, %s257_s24  ;;  %s116_s29 = scalar_lea.vmem [#allocation2], %s256_s25 }
  0x14   : > { %s123_s30 = sshll.u32 %s116_s29, 4  ;;  %p490_p13 = pnand %p278_p10, %p462_p5  ;;  %s494_s30 = int_to_ptr.vmem [resolvable:$true] %s123_s30 }
  0x15   : > { %s113_s4 = scalar_lea.sflag [#allocation3], %s112_s23  ;;  %s312_s5 = scalar_lea.hbm %s486_s28, 128 }
  0x16   : > { %p313_p2 = scmp.ne.s32.totalorder %s486_s28, %s312_s5  ;;  %p314_p3 = pneg %p490_p13 }
  0x17   : > { %s317_s8 = scalar_lea.hbm %s567_s0, 256  ;;  %p318_p5 = scmp.lt.s32.totalorder %s486_s28, %s567_s0 }
  0x18   : > { %p315_p4 = pnand %p314_p3, %p313_p2  ;;  %p319_p8 = scmp.lt.s32.totalorder %s317_s8, %s312_s5 }
  0x1a   : > { %p316_p7 = pneg %p315_p4  ;;  %p320_p10 = por %p319_p8, %p318_p5 }
  0x1c   : > { %p321_p9 = pnand %p320_p10, %p316_p7 }
  0x1e   : > { %324 = shalt.err (!%p321_p9)
}
  0x1f   : > { %s325_s17 = scalar_lea.vmem %s494_s30, 128  ;;  %s406_s19 = smov [#allocation2]  }
  0x20   : > { %p326_p0 = scmp.ne.s32.totalorder %s494_s30, %s325_s17  ;;  %s330_s23 = sshll.u32 %s406_s19, 4  ;;  %s331_s23 = int_to_ptr.vmem [resolvable:$false] %s330_s23 }
  0x21   : > { %s332_s24 = scalar_lea.vmem %s331_s23, 256  ;;  %p333_p4 = scmp.lt.s32.totalorder %s494_s30, %s331_s23 }
  0x22   : > { %p328_p1 = pnand %p326_p0, %p314_p3  ;;  %p334_p12 = scmp.lt.s32.totalorder %s332_s24, %s325_s17 }
  0x24   : > { %p329_p2 = pneg %p328_p1  ;;  %p335_p11 = por %p334_p12, %p333_p4 }
  0x26   : > { %p336_p6 = pnand %p335_p11, %p329_p2 }
  0x28   : > { %339 = shalt.err (!%p336_p6)
}
  0x29   : > { %273 = dma.hbm_to_vmem [thread:$0]  (!%p490_p13), %s486_s28, 128, %s494_s30, %s113_s4  }
  0x2a   : > { %p577_p9 = scmp.lt.s32.totalorder %s404_s12, 3  ;;  %p578_p7 = scmp.ge.s32.totalorder %s404_s12, 1 }
  0x2c   : > { %p129_p0 = pnand %p578_p7, %p577_p9 }
  0x2d   : > { %s521_s25 = sand.u32 (!%p129_p0), 1, %s396_s10   ;;  %p579_p6 = scmp.ne.s32.totalorder (!%p129_p0), %s573_s20, 0 }
  0x2e   : > { %132 = sbr.rel (%p129_p0) target bundleno = 77 (0x4d), region = 28  ;;  %s259_s26 = sshll.u32 (!%p129_p0), %s521_s25, 3 }
  0x2f   : > { %s135_s27 = scalar_lea.sflag (!%p129_p0), [#allocation3], %s521_s25  ;;  %s138_s29 = scalar_lea.vmem (!%p129_p0), [#allocation2], %s259_s26 }
  0x33   : > { %383 = dma.done.wait (%p579_p6), %s135_s27, 128  }
  0x34   : > { %385 = vsyncadd (%p579_p6), %s135_s27, 4294967168  ;;  %s158_s28 = scalar_lea.vmem [#allocation5], %s259_s26  ;;  %s263_s3 = sshll.u32 %s444_s13, 7  ;;  %v159_v0 = vld [vmem:[%s138_s29] sm:$0xff] }
  0x35   : > { %s183_s30 = sshll.u32 %s158_s28, 4  ;;  %v261_v1 = vld [vmem:[%s568_s1] ss:$0 sm:$0xff]  ;;  %s181_s8 = scalar_lea.hbm %s569_s2, %s263_s3  ;;  %s184_s30 = int_to_ptr.vmem [resolvable:$true] %s183_s30 }
  0x36   : > { %v167_v2 = vmul.f32 %v261_v1, %v159_v0  ;;  %s170_s20 = scalar_lea.sflag [#allocation4], %s521_s25  ;;  %s340_s14 = scalar_lea.vmem %s184_s30, 128 }
  0x37   : > { %p341_p11 = scmp.ne.s32.totalorder %s184_s30, %s340_s14  ;;  %p580_p12 = scmp.ne.s32.totalorder %s574_s21, 0 }
  0x38   : > { %168 = vst [vmem:[%s158_s28] sm:$0xff] %v167_v2  ;;  %s407_s16 = smov [#allocation5]  }
  0x39   : > { %p342_p13 = pnand %p341_p11, %p580_p12  ;;  %s344_s13 = sshll.u32 %s407_s16, 4  ;;  %s345_s13 = int_to_ptr.vmem [resolvable:$false] %s344_s13 }
  0x3a   : > { %s346_s17 = scalar_lea.vmem %s345_s13, 256  ;;  %p347_p3 = scmp.lt.s32.totalorder %s184_s30, %s345_s13 }
  0x3b   : > { %p343_p1 = pneg %p342_p13  ;;  %p348_p5 = scmp.lt.s32.totalorder %s346_s17, %s340_s14 }
  0x3d   : > { %p349_p8 = por %p348_p5, %p347_p3 }
  0x3f   : > { %p350_p10 = pnand %p349_p8, %p343_p1 }
  0x41   : > { %353 = shalt.err (!%p350_p10)
}
  0x42   : > { %s354_s19 = scalar_lea.hbm %s181_s8, 128  ;;  %s358_s25 = scalar_lea.hbm %s569_s2, 256 }
  0x43   : > { %p355_p2 = scmp.ne.s32.totalorder %s181_s8, %s354_s19  ;;  %p359_p7 = scmp.lt.s32.totalorder %s181_s8, %s569_s2 }
  0x44   : > { %p360_p0 = scmp.lt.s32.totalorder %s358_s25, %s354_s19 }
  0x45   : > { %p356_p4 = pnand %p355_p2, %p580_p12 }
  0x46   : > { %p361_p6 = por %p360_p0, %p359_p7 }
  0x47   : > { %p357_p9 = pneg %p356_p4 }
  0x49   : > { %p362_p11 = pnand %p361_p6, %p357_p9 }
  0x4b   : > { %365 = shalt.err (!%p362_p11)
}
  0x4c   : > { %268 = dma.vmem_to_hbm [thread:$0]  (%p580_p12), %s184_s30, 128, %s181_s8, %s170_s20  }
  0x4d PF: > { %s195_s29 = sand.u32 1, %s392_s9   ;;  %p581_p13 = scmp.ne.s32.totalorder %s575_s22, 0 }
  0x4e   : > { %p582_p1 = scmp.ge.s32.totalorder %s404_s12, 2  ;;  %s196_s28 = scalar_lea.sflag [#allocation4], %s195_s29 }
  0x50   : > { %p275_p3 = pnand %p582_p1, %p581_p13 }
  0x52   : > { %p276_p5 = pneg %p275_p3 }
  0x54   : > { %387 = dma.done.wait (%p276_p5), %s196_s28, 128  }
  0x55   : > { %389 = vsyncadd (%p276_p5), %s196_s28, 4294967168  ;;  %p15_p8 = scmp.ge.s32.totalorder %s448_s15, 4   ;;  %s583_s9 = smov %s396_s10 }
  0x56   : > { %s584_s10 = smov %s400_s11  ;;  %s585_s11 = smov %s460_s18 }
  0x57   : > { %s586_s12 = smov %s448_s15  ;;  %17 = sbr.rel (!%p15_p8) target bundleno = 5 (0x5), region = 73 }
  0x5c   :  { %201 = vsyncpa [#allocation3], 1 }
  0x5d   :  { %203 = vsyncpa [#allocation3 + $0x1], 1 }
  0x5e   :  { %204 = vsyncpa [#allocation4], 1 }
  0x5f   :  { %206 = vsyncpa [#allocation4 + $0x1], 1 }

</bundles_post_ra>
